<compile_context>
chip_gen: v7x
topology: tpu7x:2x2x1
jax: 0.10.0
libtpu: 0.0.40
codegen_flags: <defaults>
</compile_context>

<pallas_src>
import functools

import jax
import jax.numpy as jnp
from jax.experimental import pallas as pl
from jax.experimental.pallas import tpu as pltpu


def _round_up(x: int, n: int) -> int:
    return ((x + n - 1) // n) * n


def _linear_kernel(x_ref, w_ref, b_ref, o_ref):
    # MXU matmul with f32 accumulation + VPU bias broadcast-add.
    acc = jnp.dot(x_ref[...], w_ref[...], preferred_element_type=jnp.float32)
    o_ref[...] = (acc + b_ref[...]).astype(o_ref.dtype)


def _detection_head_forward(x, weight, bias, *, tm_target: int = 1024):
    """Equivalent of PyTorch `self.fc(x)` with fc = nn.Linear(in_channels, num_classes).

    Args:
      x:      [..., in_channels]
      weight: [num_classes, in_channels]  (PyTorch layout)
      bias:   [num_classes]
    Returns:
      [..., num_classes]
    """
    *lead, in_ch = x.shape
    num_classes = weight.shape[0]
    m = 1
    for d in lead:
        m *= d

    # Lane-dense output: pad N up to a multiple of 128.
    n_pad = _round_up(max(num_classes, 128), 128)

    # Row tile: largest multiple of 8 up to tm_target; pad M so TM divides it.
    m_pad8 = _round_up(max(m, 8), 8)
    tm = min(tm_target, m_pad8)
    m_pad = _round_up(m, tm)

    x2d = x.reshape(m, in_ch)
    if m_pad != m:
        x2d = jnp.pad(x2d, ((0, m_pad - m), (0, 0)))

    # Pre-transpose + pad weight/bias (constant-folded under jit).
    w_t = jnp.pad(weight.T, ((0, 0), (0, n_pad - num_classes)))        # [in_ch, n_pad]
    b2d = jnp.pad(bias, (0, n_pad - num_classes)).reshape(1, n_pad)    # [1, n_pad]

    grid = (m_pad // tm,)
    itemsize = jnp.dtype(x.dtype).itemsize
    cost = pl.CostEstimate(
        flops=2 * m_pad * in_ch * n_pad,
        transcendentals=0,
        bytes_accessed=(m_pad * in_ch + in_ch * n_pad + n_pad) * itemsize
        + m_pad * n_pad * itemsize,
    )

    out2d = pl.pallas_call(
        _linear_kernel,
        out_shape=jax.ShapeDtypeStruct((m_pad, n_pad), x.dtype),
        grid=grid,
        in_specs=[
            # Row tile of activations streams through VMEM.
            pl.BlockSpec((tm, in_ch), lambda i: (i, 0)),
            # Weight and bias stay resident (same block for every grid step).
            pl.BlockSpec((in_ch, n_pad), lambda i: (0, 0)),
            pl.BlockSpec((1, n_pad), lambda i: (0, 0)),
        ],
        out_specs=pl.BlockSpec((tm, n_pad), lambda i: (i, 0)),
        compiler_params=pltpu.CompilerParams(
            dimension_semantics=("parallel",),
        ),
        cost_estimate=cost,
    )(x2d, w_t, b2d)

    return out2d[:m, :num_classes].reshape(*lead, num_classes)


detection_head_forward = jax.jit(
    functools.partial(_detection_head_forward, tm_target=1024)
)


def _reference_forward(x, weight, bias):
    return jnp.einsum("...i,oi->...o", x, weight) + bias


if __name__ == "__main__":
    # Small shapes consistent with the module's forward (Linear over last dim).
    batch, seq, in_channels, num_classes = 2, 8, 32, 16

    key = jax.random.PRNGKey(0)
    kx, kw, kb = jax.random.split(key, 3)

    x = jax.random.normal(kx, (batch, seq, in_channels), dtype=jnp.float32)
    # Deterministic parameter init (nn.Linear-style uniform bound 1/sqrt(fan_in)).
    bound = 1.0 / (in_channels ** 0.5)
    weight = jax.random.uniform(kw, (num_classes, in_channels),
                                minval=-bound, maxval=bound, dtype=jnp.float32)
    bias = jax.random.uniform(kb, (num_classes,),
                              minval=-bound, maxval=bound, dtype=jnp.float32)

    out = detection_head_forward(x, weight, bias)
    out = jax.block_until_ready(out)

    ref = _reference_forward(x, weight, bias)
    assert out.shape == (batch, seq, num_classes)
    assert jnp.allclose(out, ref, atol=1e-5, rtol=1e-5)

    print("KERNEL_OK")
</pallas_src>

<mosaic_0001>
module attributes {stable_mosaic.version = 11 : i64} {
  func.func @_linear_kernel(%arg0: i32, %arg1: memref<16x32xf32, #tpu.memory_space<vmem>>, %arg2: memref<32x128xf32, #tpu.memory_space<vmem>>, %arg3: memref<1x128xf32, #tpu.memory_space<vmem>>, %arg4: memref<16x128xf32, #tpu.memory_space<vmem>>) attributes {dimension_semantics = [#tpu.dimension_semantics<parallel>], iteration_bounds = array<i64: 1>, scalar_prefetch = 0 : i64, scratch_operands = 0 : i64, tpu.core_type = #tpu.core_type<tc>, window_params = [{transform_indices = @transform_0, window_bounds = array<i64: 16, 32>}, {pipeline_mode = #tpu.pipeline_mode<synchronous>, transform_indices = @transform_1, window_bounds = array<i64: 32, 128>}, {pipeline_mode = #tpu.pipeline_mode<synchronous>, transform_indices = @transform_2, window_bounds = array<i64: 1, 128>}, {transform_indices = @transform_3, window_bounds = array<i64: 16, 128>}]} {
    %c0 = arith.constant 0 : index
    %c0_0 = arith.constant 0 : index
    %0 = vector.load %arg1[%c0, %c0_0] : memref<16x32xf32, #tpu.memory_space<vmem>>, vector<16x32xf32>
    %c0_1 = arith.constant 0 : index
    %c0_2 = arith.constant 0 : index
    %1 = vector.load %arg2[%c0_1, %c0_2] : memref<32x128xf32, #tpu.memory_space<vmem>>, vector<32x128xf32>
    %cst = arith.constant dense<0.000000e+00> : vector<16x128xf32>
    %2 = tpu.matmul %0, %1, %cst {dimension_numbers = #tpu.dot_dimension_numbers<[1], [0], [0], [1], [0, 0, 1, 1], [], []>} : vector<16x32xf32>, vector<32x128xf32>, vector<16x128xf32> -> vector<16x128xf32>
    %c0_3 = arith.constant 0 : index
    %c0_4 = arith.constant 0 : index
    %3 = vector.load %arg3[%c0_3, %c0_4] : memref<1x128xf32, #tpu.memory_space<vmem>>, vector<1x128xf32>
    %4 = vector.broadcast %3 : vector<1x128xf32> to vector<16x128xf32>
    %5 = arith.addf %2, %4 : vector<16x128xf32>
    %c0_5 = arith.constant 0 : index
    %c0_6 = arith.constant 0 : index
    %6 = vector.load %arg4[%c0_5, %c0_6] : memref<16x128xf32, #tpu.memory_space<vmem>>, vector<16x128xf32>
    tpu.vector_store %arg4[%c0_5, %c0_6], %5 {strides = array<i32>} : memref<16x128xf32, #tpu.memory_space<vmem>>, vector<16x128xf32>,
    return
  }
  func.func @transform_0(%arg0: i32) -> (i32, i32) {
    %c0_i32 = arith.constant 0 : i32
    %c0_i32_0 = arith.constant 0 : i32
    return %arg0, %c0_i32 : i32, i32
  }
  func.func @transform_1(%arg0: i32) -> (i32, i32) {
    %c0_i32 = arith.constant 0 : i32
    %c0_i32_0 = arith.constant 0 : i32
    %c0_i32_1 = arith.constant 0 : i32
    return %c0_i32, %c0_i32_0 : i32, i32
  }
  func.func @transform_2(%arg0: i32) -> (i32, i32) {
    %c0_i32 = arith.constant 0 : i32
    %c0_i32_0 = arith.constant 0 : i32
    %c0_i32_1 = arith.constant 0 : i32
    return %c0_i32, %c0_i32_0 : i32, i32
  }
  func.func @transform_3(%arg0: i32) -> (i32, i32) {
    %c0_i32 = arith.constant 0 : i32
    %c0_i32_0 = arith.constant 0 : i32
    return %arg0, %c0_i32 : i32, i32
  }
}

</mosaic_0001>

<bundles_post_ra>
// kernel: _detection_head_forward.1
= control target key start
LH: loop header
LB: loop body
LE: loop exit
PB: predicated region body
PF: predicated region fallthrough
CT: control target
= control target key end

     0   :  { %vm27_vm0 = vcmask 261120   ;;  %s190_s1 = inlined_call_operand.vmem [shape: f32[32,128], index: 1, kind: input, shape index: {}]   ;;  %s191_s0 = inlined_call_operand.vmem [shape: f32[16,32], index: 0, kind: input, shape index: {}]   ;;  %s192_s2 = inlined_call_operand.vmem [shape: f32[1,128], index: 2, kind: input, shape index: {}]   ;;  %s193_s3 = inlined_call_operand.vmem [shape: f32[16,128], index: 3, kind: output, shape index: {}]  }
   0x1   :  { %v16_v0 = vld [vmem:[%s190_s1] sm:$0xff]  ;;  %v17_v1 = vld [vmem:[%s190_s1 + $0x8] sm:$0xff]  ;;  %v18_v2 = vld [vmem:[%s190_s1 + $0x10] sm:$0xff] }
   0x2   :  { %v135_v3 = vpack.c.bf16 %v17_v1, %v16_v0  ;;  %v19_v4 = vld [vmem:[%s190_s1 + $0x18] sm:$0xff]  ;;  %v14_v5 = vld [vmem:[%s191_s0] sm:$0xff]  ;;  %v15_v7 = vld [vmem:[%s191_s0 + $0x8] sm:$0xff] }
   0x3   :  { %v139_v6 = vpack.c.bf16 %v19_v4, %v18_v2  ;;  %132 = vmatprep.mubr.msk.f32.mxu0 %vm27_vm0, %v14_v5  ;;  %v115_v8 = vld [vmem:[%s192_s2] ss:$0 sm:$0xff] }
   0x4   :  { %136 = vmatprep.subr.bf16.mxu0 %v135_v3 }
   0x5   :  { %138 = vmatpush3.bf16.msra.mxu0 %v135_v3 }
   0x6   :  { %140 = vmatprep.subr.bf16.mxu0 %v139_v6 }
   0x9   :  { %142 = vmatpush3.bf16.msra.mxu0 %v139_v6 }
   0xc   :  { %133 = vmatmul.mubr.msk.f32.vlgmr.msra.gmra.mrb[0].mxu0 %vm27_vm0, %v15_v7 }
  0xdf   :  { %v134_v9 = vpop.f32.mrb[0].mxu0 }
  0xe0   :  { %v106_v10 = vadd.f32 %v134_v9, %v115_v8  ;;  %v100_v11 = vpop.f32.mrb[1].mxu0 }
  0xe1   :  { %v101_v12 = vadd.f32 %v115_v8, %v100_v11 }
  0xe2   :  { %110 = vst [vmem:[%s193_s3 + $0x8] sm:$0xff] %v106_v10 }
  0xe3   :  { %109 = vst [vmem:[%s193_s3] sm:$0xff] %v101_v12 }

</bundles_post_ra>
